<compile_context>
chip_gen: v7x
topology: tpu7x:2x2x1
jax: 0.10.0
libtpu: 0.0.40
codegen_flags: <defaults>
</compile_context>

<pallas_src>
import math
import functools

import jax
import jax.numpy as jnp
from jax import lax
from jax.experimental import pallas as pl
from jax.experimental.pallas import tpu as pltpu


def _pe_add_kernel(x_ref, pe_ref, o_ref, *, L, TL, p_drop, training, seed):
    # x_ref/o_ref: (B, TL) VMEM tile of the flattened (B, S*D) input.
    # pe_ref:      (1, TL) matching slice of the flattened PE table.
    x = x_ref[...].astype(jnp.float32)
    pe = pe_ref[...].astype(jnp.float32)
    y = x + pe  # broadcast over the batch rows

    if training and p_drop > 0.0:
        Bb, TLb = x_ref.shape
        # Global element index of every entry of this tile (row-major over (B, L)).
        row = lax.broadcasted_iota(jnp.uint32, (Bb, TLb), 0)
        col = lax.broadcasted_iota(jnp.uint32, (Bb, TLb), 1)
        base = (pl.program_id(0) * TL).astype(jnp.uint32)
        idx = row * jnp.uint32(L) + base + col

        # Murmur3-style integer finalizer: uniform 32-bit hash of (idx, seed).
        h = idx ^ jnp.uint32(seed)
        h = h ^ (h >> 16)
        h = h * jnp.uint32(0x85EBCA6B)
        h = h ^ (h >> 13)
        h = h * jnp.uint32(0xC2B2AE35)
        h = h ^ (h >> 16)

        # Compare top 24 bits (always non-negative in int32) against an integer
        # threshold: drop with probability ~p_drop, keep & rescale otherwise.
        hv = (h >> 8).astype(jnp.int32)
        threshold = jnp.int32(int(round(p_drop * float(1 << 24))))
        keep = hv >= threshold
        scale = jnp.float32(1.0 / (1.0 - p_drop))
        y = jnp.where(keep, y * scale, jnp.float32(0.0))

    o_ref[...] = y.astype(o_ref.dtype)


def _build_pe(S, D):
    """The PyTorch buffer pe[:S, :D] (sin on even cols, cos on odd cols)."""
    position = jnp.arange(S, dtype=jnp.float32)[:, None]
    div_term = jnp.exp(
        jnp.arange(0, D, 2, dtype=jnp.float32) * (-(math.log(10000.0) / D))
    )
    pe = jnp.zeros((S, D), jnp.float32)
    pe = pe.at[:, 0::2].set(jnp.sin(position * div_term))
    pe = pe.at[:, 1::2].set(jnp.cos(position * div_term))
    return pe


def _choose_tile(L, B, dtype_bytes=4, target_bytes=2 << 20):
    """Largest multiple-of-128 divisor of L with B*TL*dtype_bytes <= ~target."""
    if L % 128 != 0:
        return L  # small / irregular case: take the whole (full-dim) block
    max_tl = max(128, (target_bytes // (dtype_bytes * max(B, 1))) // 128 * 128)
    cap = min(max_tl, L)
    for cand in range(cap, 127, -128):
        if L % cand == 0:
            return cand
    return L


def positional_encoding(x, *, dropout_p=0.1, training=False, seed=0):
    """x: (B, S, D). Returns x + PE (and inverted dropout if training)."""
    B, S, D = x.shape
    L = S * D
    pe_flat = _build_pe(S, D).reshape(1, L)
    x_flat = x.reshape(B, L)

    TL = _choose_tile(L, B)
    grid = (L // TL,)

    kernel = functools.partial(
        _pe_add_kernel,
        L=L,
        TL=TL,
        p_drop=float(dropout_p),
        training=bool(training),
        seed=int(seed) & 0xFFFFFFFF,
    )

    out_flat = pl.pallas_call(
        kernel,
        out_shape=jax.ShapeDtypeStruct((B, L), x.dtype),
        grid=grid,
        in_specs=[
            pl.BlockSpec((B, TL), lambda l: (0, l)),   # x tile
            pl.BlockSpec((1, TL), lambda l: (0, l)),   # matching PE slice
        ],
        out_specs=pl.BlockSpec((B, TL), lambda l: (0, l)),
        compiler_params=pltpu.CompilerParams(
            dimension_semantics=("parallel",),
        ),
    )(x_flat, pe_flat)
    return out_flat.reshape(B, S, D)


def _reference(x):
    """Pure-JAX reference matching the PyTorch module in eval mode."""
    B, S, D = x.shape
    return x + _build_pe(S, D)[None]


if __name__ == "__main__":
    B, S, D = 2, 8, 32  # batch, seq_len, d_model
    key = jax.random.PRNGKey(0)
    x = jax.random.normal(key, (B, S, D), dtype=jnp.float32)

    # Eval mode (dropout == identity) -> deterministic, check against reference.
    out = positional_encoding(x, dropout_p=0.1, training=False)
    out = jax.block_until_ready(out)
    ref = _reference(x)
    assert out.shape == (B, S, D)
    assert jnp.allclose(out, ref, atol=1e-5, rtol=1e-5), "mismatch vs reference"

    # Training path (inverted dropout): run once and sanity-check the shape.
    out_train = positional_encoding(x, dropout_p=0.1, training=True, seed=42)
    out_train = jax.block_until_ready(out_train)
    assert out_train.shape == (B, S, D)

    print("KERNEL_OK")
</pallas_src>

<mosaic_0001>
module attributes {stable_mosaic.version = 11 : i64} {
  func.func @_pe_add_kernel(%arg0: i32, %arg1: memref<2x256xf32, #tpu.memory_space<vmem>>, %arg2: memref<1x256xf32, #tpu.memory_space<vmem>>, %arg3: memref<2x256xf32, #tpu.memory_space<vmem>>) attributes {dimension_semantics = [#tpu.dimension_semantics<parallel>], iteration_bounds = array<i64: 1>, scalar_prefetch = 0 : i64, scratch_operands = 0 : i64, tpu.core_type = #tpu.core_type<tc>, window_params = [{transform_indices = @transform_0, window_bounds = array<i64: 2, 256>}, {transform_indices = @transform_1, window_bounds = array<i64: 1, 256>}, {transform_indices = @transform_2, window_bounds = array<i64: 2, 256>}]} {
    %c0 = arith.constant 0 : index
    %c0_0 = arith.constant 0 : index
    %0 = vector.load %arg1[%c0, %c0_0] : memref<2x256xf32, #tpu.memory_space<vmem>>, vector<2x256xf32>
    %c0_1 = arith.constant 0 : index
    %c0_2 = arith.constant 0 : index
    %1 = vector.load %arg2[%c0_1, %c0_2] : memref<1x256xf32, #tpu.memory_space<vmem>>, vector<1x256xf32>
    %2 = vector.broadcast %1 : vector<1x256xf32> to vector<2x256xf32>
    %3 = arith.addf %0, %2 : vector<2x256xf32>
    %c0_3 = arith.constant 0 : index
    %c0_4 = arith.constant 0 : index
    %4 = vector.load %arg3[%c0_3, %c0_4] : memref<2x256xf32, #tpu.memory_space<vmem>>, vector<2x256xf32>
    tpu.vector_store %arg3[%c0_3, %c0_4], %3 {strides = array<i32>} : memref<2x256xf32, #tpu.memory_space<vmem>>, vector<2x256xf32>,
    return
  }
  func.func @transform_0(%arg0: i32) -> (i32, i32) {
    %c0_i32 = arith.constant 0 : i32
    %c0_i32_0 = arith.constant 0 : i32
    return %c0_i32, %arg0 : i32, i32
  }
  func.func @transform_1(%arg0: i32) -> (i32, i32) {
    %c0_i32 = arith.constant 0 : i32
    %c0_i32_0 = arith.constant 0 : i32
    return %c0_i32, %arg0 : i32, i32
  }
  func.func @transform_2(%arg0: i32) -> (i32, i32) {
    %c0_i32 = arith.constant 0 : i32
    %c0_i32_0 = arith.constant 0 : i32
    return %c0_i32, %arg0 : i32, i32
  }
}

</mosaic_0001>

<bundles_post_ra>
// kernel: tpu_custom_call.1
= control target key start
LH: loop header
LB: loop body
LE: loop exit
PB: predicated region body
PF: predicated region fallthrough
CT: control target
= control target key end

     0   :  { %7 = vsyncpa [#allocation3], 0  ;;  %s157_s0 = inlined_call_operand.hbm [shape: f32[2,256], index: 0, kind: input, shape index: {}]   ;;  %s158_s1 = inlined_call_operand.vmem [shape: f32[1,256], index: 1, kind: input, shape index: {}]   ;;  %s159_s2 = inlined_call_operand.hbm [shape: f32[2,256], index: 2, kind: output, shape index: {}]  }
   0x1   :  { %8 = vsyncpa [#allocation4], 0  ;;  %s112_s9 = smov [#allocation2]   ;;  %s64_s13 = scalar_lea.hbm %s157_s0, 64 }
   0x2   :  { %s15_s10 = sshll.u32 %s112_s9, 4  ;;  %p65_p0 = scmp.ne.s32.totalorder %s157_s0, %s64_s13  ;;  %s16_s10 = int_to_ptr.vmem [resolvable:$true] %s15_s10 }
   0x3   :  { %p68_p1 = scmp.lt.u32.totalorder %s64_s13, %s157_s0 }
   0x5   :  { %p70_p2 = pnand %p68_p1, %p65_p0 }
   0x7   :  { %73 = shalt.err (!%p70_p2)
}
   0x8   :  { %s74_s18 = scalar_lea.vmem %s16_s10, 64  ;;  %p79_p4 = scmp.lt.s32.totalorder %s16_s10, %s16_s10 }
   0x9   :  { %p75_p3 = scmp.ne.s32.totalorder %s16_s10, %s74_s18  ;;  %p80_p5 = scmp.lt.s32.totalorder %s74_s18, %s74_s18 }
   0xb   :  { %p81_p6 = por %p80_p5, %p79_p4 }
   0xd   :  { %p82_p7 = pnand %p81_p6, %p75_p3 }
   0xf   :  { %85 = shalt.err (!%p82_p7)
}
  0x10   :  { %18 = dma.hbm_to_vmem [thread:$0]  %s157_s0, 64, %s16_s10, [#allocation3]  }
  0x11   :  { %108 = dma.done.wait [#allocation3], 64  }
  0x12   :  { %109 = vsyncadd [#allocation3], 4294967232  ;;  %v27_v0 = vlaneseq  ;;  %v113_v1 = vmov 1983009808   ;;  %v25_v7 = vld [vmem:[%s158_s1] sm:$0x3] }
  0x13   :  { %v37_v2 = vunpack.c.l.s4 %v113_v1  ;;  %v24_v12 = vld [vmem:[#allocation2] sm:$0xf]  ;;  %s114_s23 = smov [#allocation5]  }
  0x14   :  { %v28_v3 = vshrl.u32 %v27_v0, 7  ;;  %s52_s0 = sshll.u32 %s114_s23, 4  ;;  %s53_s0 = int_to_ptr.vmem [resolvable:$true] %s52_s0 }
  0x15   :  { %v38_v6 = vunpack.c.0.s8 %v37_v2  ;;  %s86_s24 = scalar_lea.vmem %s53_s0, 64  ;;  %p91_p9 = scmp.lt.s32.totalorder %s53_s0, %s53_s0 }
  0x16   :  { %v29_v4 = vsub.s32 0, %v28_v3  ;;  %v33_v5 = vsub.s32 1, %v28_v3  ;;  %p87_p8 = scmp.ne.s32.totalorder %s53_s0, %s86_s24  ;;  %p92_p10 = scmp.lt.s32.totalorder %s86_s24, %s86_s24 }
  0x17   :  { %v41_v10 = vsub.s32 %v38_v6, %v28_v3 }
  0x18   :  { %v30_v8 = vrot.slane %v25_v7, %v29_v4  ;;  %v34_v9 = vrot.slane %v25_v7, %v33_v5  ;;  %p93_p11 = por %p92_p10, %p91_p9 }
  0x1a   :  { %v35_v11 = vcombine.low %v30_v8, %v34_v9  ;;  %p94_p12 = pnand %p93_p11, %p87_p8 }
  0x1c   :  { %v42_v13 = vrot.slane %v35_v11, %v41_v10 }
  0x1e   :  { %v44_v14 = vadd.f32 %v42_v13, %v24_v12 }
  0x20   :  { %45 = vst [vmem:[#allocation5] sm:$0xf] %v44_v14 }
  0x21   :  { %97 = shalt.err (!%p94_p12)
}
  0x22   :  { %s98_s26 = scalar_lea.hbm %s159_s2, 64 }
  0x23   :  { %p99_p13 = scmp.ne.s32.totalorder %s159_s2, %s98_s26  ;;  %p102_p0 = scmp.lt.u32.totalorder %s98_s26, %s159_s2 }
  0x25   :  { %p104_p1 = pnand %p102_p0, %p99_p13 }
  0x27   :  { %107 = shalt.err (!%p104_p1)
}
  0x28   :  { %55 = dma.vmem_to_hbm [thread:$0]  %s53_s0, 64, %s159_s2, [#allocation4]  }
  0x29   :  { %110 = dma.done.wait [#allocation4], 64  }
  0x2a   :  { %111 = vsyncadd [#allocation4], 4294967232 }
  0x2b   :  { %59 = vsyncpa [#allocation3], 1 }
  0x2c   :  { %60 = vsyncpa [#allocation4], 1 }

</bundles_post_ra>
